<compile_context>
chip_gen: v7x
topology: tpu7x:2x2x1
jax: 0.10.0
libtpu: 0.0.40
codegen_flags: <defaults>
</compile_context>

<pallas_src>
import jax
import jax.numpy as jnp
from jax.experimental import pallas as pl
from jax.experimental.pallas import tpu as pltpu

D_IN, H1, H2, D_OUT = 1408, 256, 64, 2
H2_PAD = 128  # 64-wide hidden stage padded to a full 128-lane vreg width


def _round_up(n, m):
    return ((n + m - 1) // m) * m


def _cdiv(a, b):
    return -(-a // b)


def _mlp_kernel(x_ref, w1_ref, b1_ref, w2_ref, b2_ref, w3_ref, b3_ref, o_ref):
    # Three matmuls + ReLUs fused per batch tile.  bf16 MXU operands, f32 acc.
    # Cast x in-kernel: the HBM stream stays at the caller's dtype (no extra
    # XLA convert pass over x in the wrapper).
    x = x_ref[...].astype(jnp.bfloat16)                                     # (TB, 1408)
    h1 = jnp.dot(x, w1_ref[...], preferred_element_type=jnp.float32) + b1_ref[...]
    h1 = jnp.maximum(h1, 0.0).astype(jnp.bfloat16)                          # (TB, 256)
    h2 = jnp.dot(h1, w2_ref[...], preferred_element_type=jnp.float32) + b2_ref[...]
    h2 = jnp.maximum(h2, 0.0).astype(jnp.bfloat16)                          # (TB, 128) padded
    y = jnp.dot(h2, w3_ref[...], preferred_element_type=jnp.float32) + b3_ref[...]
    # TODO(synk): (TB, 2) store is lane-sparse (masked vst); only ~10% of a v7x
    # step and negligible on v5e/v6e, so kept simple.
    o_ref[...] = y.astype(o_ref.dtype)                                      # (TB, 2)


def _tile_plan(batch, x_dtype):
    """Device-generation-aware batch tile (trace-time Python, all static)."""
    kind = jax.devices()[0].device_kind.lower()
    bf16_stream = jnp.dtype(x_dtype) == jnp.dtype(jnp.bfloat16)
    row_mult = 16 if bf16_stream else 8  # full vreg packing for bf16 rows
    two_cores = "v7" in kind

    if two_cores:                       # v7x: ~3.2 TB/s HBM, 64 MiB VMEM/TC
        tile = 4096 if bf16_stream else 2048
        vmem_limit = 48 * 1024 * 1024
    elif "v6" in kind:                  # v6e
        tile = 2048
        vmem_limit = 64 * 1024 * 1024
    else:                               # v5e / unknown: smaller scoped VMEM
        tile = 2048 if bf16_stream else 1024
        vmem_limit = 64 * 1024 * 1024

    tb = min(tile, _round_up(batch, row_mult))

    # Only on 2-TC v7x: keep the grid length even so both TensorCores get
    # balanced work (an odd grid gives up to a 2:1 imbalance).
    if two_cores:
        n = _cdiv(batch, tb)
        if n % 2 == 1:
            cand = _round_up(_cdiv(batch, n + 1), row_mult)
            if cand < tb and _cdiv(batch, cand) % 2 == 0:
                tb = cand

    return tb, vmem_limit


@jax.jit
def mlp_head_forward(x, w1, b1, w2, b2, w3, b3):
    """x: [B, 1408]; weights in [in, out] layout; returns [B, 2] f32."""
    B = x.shape[0]
    tb, vmem_limit = _tile_plan(B, x.dtype)
    grid = (_cdiv(B, tb),)  # no jnp.pad: clamped final block only writes rows < B

    # Weights -> bf16 (tiny, one-time); H2 stage zero-padded to 128 lanes so
    # fc2/fc3 stay lane-dense; biases stay f32 as (1, N).
    w1b = w1.astype(jnp.bfloat16)
    w2b = jnp.pad(w2, ((0, 0), (0, H2_PAD - H2))).astype(jnp.bfloat16)
    w3b = jnp.pad(w3, ((0, H2_PAD - H2), (0, 0))).astype(jnp.bfloat16)
    b1r = b1.reshape(1, H1).astype(jnp.float32)
    b2r = jnp.pad(b2.reshape(1, H2), ((0, 0), (0, H2_PAD - H2))).astype(jnp.float32)
    b3r = b3.reshape(1, D_OUT).astype(jnp.float32)

    # Weights/biases: full-extent blocks with constant index_map -> VMEM-resident.
    wspec = lambda shape: pl.BlockSpec(shape, lambda i: (0, 0))

    x_bytes = jnp.dtype(x.dtype).itemsize
    flops = 2 * B * (D_IN * H1 + H1 * H2_PAD + H2_PAD * D_OUT)
    bytes_accessed = (
        B * D_IN * x_bytes                                  # x stream (native dtype)
        + (D_IN * H1 + H1 * H2_PAD + H2_PAD * D_OUT) * 2    # weights (bf16)
        + (H1 + H2_PAD + D_OUT) * 4                         # biases (f32)
        + B * D_OUT * 4                                     # output (f32)
    )

    out = pl.pallas_call(
        _mlp_kernel,
        out_shape=jax.ShapeDtypeStruct((B, D_OUT), jnp.float32),
        grid_spec=pltpu.PrefetchScalarGridSpec(
            num_scalar_prefetch=0,
            grid=grid,
            in_specs=[
                pl.BlockSpec((tb, D_IN), lambda i: (i, 0)),   # x tile (streamed)
                wspec((D_IN, H1)),                            # w1 (resident)
                wspec((1, H1)),                               # b1
                wspec((H1, H2_PAD)),                          # w2 (padded)
                wspec((1, H2_PAD)),                           # b2 (padded)
                wspec((H2_PAD, D_OUT)),                       # w3 (padded)
                wspec((1, D_OUT)),                            # b3
            ],
            out_specs=pl.BlockSpec((tb, D_OUT), lambda i: (i, 0)),
        ),
        compiler_params=pltpu.CompilerParams(
            dimension_semantics=("parallel",),
            vmem_limit_bytes=vmem_limit),
        cost_estimate=pl.CostEstimate(
            flops=flops, transcendentals=0, bytes_accessed=bytes_accessed),
    )(x, w1b, b1r, w2b, b2r, w3b, b3r)

    return out


def init_params(key):
    """Deterministic synthetic parameters (PyTorch-Linear-like uniform init),
    returned already transposed to [in, out] layout, f32."""
    ks = jax.random.split(key, 6)

    def linear(kw, kb, fan_in, fan_out):
        bound = 1.0 / (fan_in ** 0.5)
        # PyTorch stores W as (out, in); transpose to (in, out) for the kernel.
        w = jax.random.uniform(kw, (fan_out, fan_in), jnp.float32, -bound, bound).T
        b = jax.random.uniform(kb, (fan_out,), jnp.float32, -bound, bound)
        return w, b

    w1, b1 = linear(ks[0], ks[1], D_IN, H1)
    w2, b2 = linear(ks[2], ks[3], H1, H2)
    w3, b3 = linear(ks[4], ks[5], H2, D_OUT)
    return w1, b1, w2, b2, w3, b3


def reference_forward(x, w1, b1, w2, b2, w3, b3):
    h1 = jnp.maximum(x @ w1 + b1, 0.0)
    h2 = jnp.maximum(h1 @ w2 + b2, 0.0)
    return h2 @ w3 + b3


if __name__ == "__main__":
    key = jax.random.PRNGKey(0)
    kp, kx = jax.random.split(key)

    params = init_params(kp)
    B = 8  # small demo batch; feature dim (1408) is fixed by the module
    x = jax.random.normal(kx, (B, D_IN), dtype=jnp.float32)

    out = jax.block_until_ready(mlp_head_forward(x, *params))
    ref = reference_forward(x, *params)

    assert out.shape == (B, D_OUT)
    # bf16 matmul operands with f32 accumulation -> loose-ish tolerance vs f32 ref.
    assert jnp.allclose(out, ref, atol=5e-2, rtol=5e-2), "mismatch vs JAX reference"

    print("KERNEL_OK")
</pallas_src>

<mosaic_0001>
module attributes {stable_mosaic.version = 11 : i64} {
  func.func @_mlp_kernel(%arg0: i32, %arg1: memref<8x1408xf32, #tpu.memory_space<vmem>>, %arg2: memref<1408x256xbf16, #tpu.memory_space<vmem>>, %arg3: memref<1x256xf32, #tpu.memory_space<vmem>>, %arg4: memref<256x128xbf16, #tpu.memory_space<vmem>>, %arg5: memref<1x128xf32, #tpu.memory_space<vmem>>, %arg6: memref<128x2xbf16, #tpu.memory_space<vmem>>, %arg7: memref<1x2xf32, #tpu.memory_space<vmem>>, %arg8: memref<8x2xf32, #tpu.memory_space<vmem>>) attributes {dimension_semantics = [#tpu.dimension_semantics<parallel>], iteration_bounds = array<i64: 1>, scalar_prefetch = 0 : i64, scratch_operands = 0 : i64, tpu.core_type = #tpu.core_type<tc>, window_params = [{transform_indices = @transform_0, window_bounds = array<i64: 8, 1408>}, {pipeline_mode = #tpu.pipeline_mode<synchronous>, transform_indices = @transform_1, window_bounds = array<i64: 1408, 256>}, {pipeline_mode = #tpu.pipeline_mode<synchronous>, transform_indices = @transform_2, window_bounds = array<i64: 1, 256>}, {pipeline_mode = #tpu.pipeline_mode<synchronous>, transform_indices = @transform_3, window_bounds = array<i64: 256, 128>}, {pipeline_mode = #tpu.pipeline_mode<synchronous>, transform_indices = @transform_4, window_bounds = array<i64: 1, 128>}, {pipeline_mode = #tpu.pipeline_mode<synchronous>, transform_indices = @transform_5, window_bounds = array<i64: 128, 2>}, {pipeline_mode = #tpu.pipeline_mode<synchronous>, transform_indices = @transform_6, window_bounds = array<i64: 1, 2>}, {transform_indices = @transform_7, window_bounds = array<i64: 8, 2>}]} {
    %c0 = arith.constant 0 : index
    %c0_0 = arith.constant 0 : index
    %0 = vector.load %arg1[%c0, %c0_0] : memref<8x1408xf32, #tpu.memory_space<vmem>>, vector<8x1408xf32>
    %1 = arith.truncf %0 : vector<8x1408xf32> to vector<8x1408xbf16>
    %c0_1 = arith.constant 0 : index
    %c0_2 = arith.constant 0 : index
    %2 = vector.load %arg2[%c0_1, %c0_2] : memref<1408x256xbf16, #tpu.memory_space<vmem>>, vector<1408x256xbf16>
    %cst = arith.constant dense<0.000000e+00> : vector<8x256xf32>
    %3 = tpu.matmul %1, %2, %cst {dimension_numbers = #tpu.dot_dimension_numbers<[1], [0], [0], [1], [0, 0, 1, 1], [], []>} : vector<8x1408xbf16>, vector<1408x256xbf16>, vector<8x256xf32> -> vector<8x256xf32>
    %c0_3 = arith.constant 0 : index
    %c0_4 = arith.constant 0 : index
    %4 = vector.load %arg3[%c0_3, %c0_4] : memref<1x256xf32, #tpu.memory_space<vmem>>, vector<1x256xf32>
    %5 = vector.broadcast %4 : vector<1x256xf32> to vector<8x256xf32>
    %6 = arith.addf %3, %5 : vector<8x256xf32>
    %cst_5 = arith.constant 0.000000e+00 : f32
    %7 = vector.broadcast %cst_5 : f32 to vector<8x256xf32>
    %8 = arith.maximumf %6, %7 : vector<8x256xf32>
    %9 = arith.truncf %8 : vector<8x256xf32> to vector<8x256xbf16>
    %c0_6 = arith.constant 0 : index
    %c0_7 = arith.constant 0 : index
    %10 = vector.load %arg4[%c0_6, %c0_7] : memref<256x128xbf16, #tpu.memory_space<vmem>>, vector<256x128xbf16>
    %cst_8 = arith.constant dense<0.000000e+00> : vector<8x128xf32>
    %11 = tpu.matmul %9, %10, %cst_8 {dimension_numbers = #tpu.dot_dimension_numbers<[1], [0], [0], [1], [0, 0, 1, 1], [], []>} : vector<8x256xbf16>, vector<256x128xbf16>, vector<8x128xf32> -> vector<8x128xf32>
    %c0_9 = arith.constant 0 : index
    %c0_10 = arith.constant 0 : index
    %12 = vector.load %arg5[%c0_9, %c0_10] : memref<1x128xf32, #tpu.memory_space<vmem>>, vector<1x128xf32>
    %13 = vector.broadcast %12 : vector<1x128xf32> to vector<8x128xf32>
    %14 = arith.addf %11, %13 : vector<8x128xf32>
    %cst_11 = arith.constant 0.000000e+00 : f32
    %15 = vector.broadcast %cst_11 : f32 to vector<8x128xf32>
    %16 = arith.maximumf %14, %15 : vector<8x128xf32>
    %17 = arith.truncf %16 : vector<8x128xf32> to vector<8x128xbf16>
    %c0_12 = arith.constant 0 : index
    %c0_13 = arith.constant 0 : index
    %18 = vector.load %arg6[%c0_12, %c0_13] : memref<128x2xbf16, #tpu.memory_space<vmem>>, vector<128x2xbf16>
    %cst_14 = arith.constant dense<0.000000e+00> : vector<8x2xf32>
    %19 = tpu.matmul %17, %18, %cst_14 {dimension_numbers = #tpu.dot_dimension_numbers<[1], [0], [0], [1], [0, 0, 1, 1], [], []>} : vector<8x128xbf16>, vector<128x2xbf16>, vector<8x2xf32> -> vector<8x2xf32>
    %c0_15 = arith.constant 0 : index
    %c0_16 = arith.constant 0 : index
    %20 = vector.load %arg7[%c0_15, %c0_16] : memref<1x2xf32, #tpu.memory_space<vmem>>, vector<1x2xf32>
    %21 = vector.broadcast %20 : vector<1x2xf32> to vector<8x2xf32>
    %22 = arith.addf %19, %21 : vector<8x2xf32>
    %c0_17 = arith.constant 0 : index
    %c0_18 = arith.constant 0 : index
    %23 = vector.load %arg8[%c0_17, %c0_18] : memref<8x2xf32, #tpu.memory_space<vmem>>, vector<8x2xf32>
    tpu.vector_store %arg8[%c0_17, %c0_18], %22 {strides = array<i32>} : memref<8x2xf32, #tpu.memory_space<vmem>>, vector<8x2xf32>,
    return
  }
  func.func @transform_0(%arg0: i32) -> (i32, i32) {
    %c0_i32 = arith.constant 0 : i32
    %c0_i32_0 = arith.constant 0 : i32
    return %arg0, %c0_i32 : i32, i32
  }
  func.func @transform_1(%arg0: i32) -> (i32, i32) {
    %c0_i32 = arith.constant 0 : i32
    %c0_i32_0 = arith.constant 0 : i32
    %c0_i32_1 = arith.constant 0 : i32
    return %c0_i32, %c0_i32_0 : i32, i32
  }
  func.func @transform_2(%arg0: i32) -> (i32, i32) {
    %c0_i32 = arith.constant 0 : i32
    %c0_i32_0 = arith.constant 0 : i32
    %c0_i32_1 = arith.constant 0 : i32
    return %c0_i32, %c0_i32_0 : i32, i32
  }
  func.func @transform_3(%arg0: i32) -> (i32, i32) {
    %c0_i32 = arith.constant 0 : i32
    %c0_i32_0 = arith.constant 0 : i32
    %c0_i32_1 = arith.constant 0 : i32
    return %c0_i32, %c0_i32_0 : i32, i32
  }
  func.func @transform_4(%arg0: i32) -> (i32, i32) {
    %c0_i32 = arith.constant 0 : i32
    %c0_i32_0 = arith.constant 0 : i32
    %c0_i32_1 = arith.constant 0 : i32
    return %c0_i32, %c0_i32_0 : i32, i32
  }
  func.func @transform_5(%arg0: i32) -> (i32, i32) {
    %c0_i32 = arith.constant 0 : i32
    %c0_i32_0 = arith.constant 0 : i32
    %c0_i32_1 = arith.constant 0 : i32
    return %c0_i32, %c0_i32_0 : i32, i32
  }
  func.func @transform_6(%arg0: i32) -> (i32, i32) {
    %c0_i32 = arith.constant 0 : i32
    %c0_i32_0 = arith.constant 0 : i32
    %c0_i32_1 = arith.constant 0 : i32
    return %c0_i32, %c0_i32_0 : i32, i32
  }
  func.func @transform_7(%arg0: i32) -> (i32, i32) {
    %c0_i32 = arith.constant 0 : i32
    %c0_i32_0 = arith.constant 0 : i32
    return %arg0, %c0_i32 : i32, i32
  }
}

</mosaic_0001>

<bundles_post_ra>
// kernel: mlp_head_forward.1
= control target key start
LH: loop header
LB: loop body
LE: loop exit
PB: predicated region body
PF: predicated region fallthrough
CT: control target
= control target key end

     0   :  { %12 = vsyncpa [#allocation3], 0  ;;  %s2676_s0 = inlined_call_operand.hbm [shape: f32[8,1408], index: 0, kind: input, shape index: {}]   ;;  %s2677_s1 = inlined_call_operand.hbm [shape: bf16[1408,256], index: 1, kind: input, shape index: {}]   ;;  %s2678_s2 = inlined_call_operand.hbm [shape: f32[1,256], index: 2, kind: input, shape index: {}]   ;;  %s2679_s3 = inlined_call_operand.hbm [shape: bf16[256,128], index: 3, kind: input, shape index: {}]   ;;  %s2680_s4 = inlined_call_operand.hbm [shape: f32[1,128], index: 4, kind: input, shape index: {}]   ;;  %s2681_s5 = inlined_call_operand.hbm [shape: bf16[128,2], index: 5, kind: input, shape index: {}]   ;;  %s2682_s6 = inlined_call_operand.hbm [shape: f32[1,2], index: 6, kind: input, shape index: {}]   ;;  %s2683_s7 = inlined_call_operand.hbm [shape: f32[8,2], index: 7, kind: output, shape index: {}]  }
   0x1   :  { %13 = vsyncpa [#allocation6], 0 }
   0x2   :  { %14 = vsyncpa [#allocation9], 0 }
   0x3   :  { %15 = vsyncpa [#allocation12], 0 }
   0x4   :  { %16 = vsyncpa [#allocation4], 0  ;;  %s2525_s24 = smov [#allocation5]   ;;  %s2339_s28 = scalar_lea.hbm %s2677_s1, 22528 }
   0x5   :  { %s32_s25 = sshll.u32 %s2525_s24, 4  ;;  %p2340_p0 = scmp.ne.s32.totalorder %s2677_s1, %s2339_s28  ;;  %s33_s25 = int_to_ptr.vmem [resolvable:$true] %s32_s25 }
   0x6   :  { %p2343_p1 = scmp.lt.u32.totalorder %s2339_s28, %s2677_s1 }
   0x8   :  { %p2345_p2 = pnand %p2343_p1, %p2340_p0 }
   0xa   :  { %2348 = shalt.err (!%p2345_p2)
}
   0xb   :  { %s2349_s10 = scalar_lea.vmem %s33_s25, 22528  ;;  %p2354_p4 = scmp.lt.s32.totalorder %s33_s25, %s33_s25 }
   0xc   :  { %p2350_p3 = scmp.ne.s32.totalorder %s33_s25, %s2349_s10  ;;  %p2355_p5 = scmp.lt.s32.totalorder %s2349_s10, %s2349_s10 }
   0xe   :  { %p2356_p6 = por %p2355_p5, %p2354_p4 }
  0x10   :  { %p2357_p7 = pnand %p2356_p6, %p2350_p3 }
  0x12   :  { %2360 = shalt.err (!%p2357_p7)
}
  0x13   :  { %s2526_s11 = smov 128   ;;  %s2527_s12 = smov 8  }
  0x14   :  { %38 = dma.hbm_to_vmem [thread:$0]  %s2677_s1, 22528, %s33_s25, [#allocation6], %s2526_s11, %s2526_s11, %s2527_s12  }
  0x15   :  { %s2528_s15 = smov [#allocation8]   ;;  %s2361_s19 = scalar_lea.hbm %s2679_s3, 2048 }
  0x16   :  { %s54_s16 = sshll.u32 %s2528_s15, 4  ;;  %p2362_p8 = scmp.ne.s32.totalorder %s2679_s3, %s2361_s19  ;;  %s55_s16 = int_to_ptr.vmem [resolvable:$true] %s54_s16 }
  0x17   :  { %p2365_p9 = scmp.lt.u32.totalorder %s2361_s19, %s2679_s3 }
  0x19   :  { %p2367_p10 = pnand %p2365_p9, %p2362_p8 }
  0x1b   :  { %2370 = shalt.err (!%p2367_p10)
}
  0x1c   :  { %s2371_s24 = scalar_lea.vmem %s55_s16, 2048  ;;  %p2376_p12 = scmp.lt.s32.totalorder %s55_s16, %s55_s16 }
  0x1d   :  { %p2372_p11 = scmp.ne.s32.totalorder %s55_s16, %s2371_s24  ;;  %p2377_p13 = scmp.lt.s32.totalorder %s2371_s24, %s2371_s24 }
  0x1f   :  { %p2378_p0 = por %p2377_p13, %p2376_p12 }
  0x21   :  { %p2379_p1 = pnand %p2378_p0, %p2372_p11 }
  0x23   :  { %2382 = shalt.err (!%p2379_p1)
}
  0x24   :  { %s2529_s1 = smov 64   ;;  %s2530_s25 = smov 4  }
  0x25   :  { %60 = dma.hbm_to_vmem [thread:$0]  %s2679_s3, 2048, %s55_s16, [#allocation9], %s2529_s1, %s2529_s1, %s2530_s25  }
  0x26   :  { %s2531_s28 = smov [#allocation11]   ;;  %s2532_s30 = smov [#allocation2]  }
  0x27   :  { %s76_s29 = sshll.u32 %s2531_s28, 4  ;;  %s23_s8 = sshll.u32 %s2532_s30, 4  ;;  %s77_s29 = int_to_ptr.vmem [resolvable:$true] %s76_s29  ;;  %s24_s8 = int_to_ptr.vmem [resolvable:$true] %s23_s8 }
  0x28   :  { %s2383_s11 = scalar_lea.hbm %s2681_s5, 1024 }
  0x29   :  { %p2384_p2 = scmp.ne.s32.totalorder %s2681_s5, %s2383_s11  ;;  %p2387_p3 = scmp.lt.u32.totalorder %s2383_s11, %s2681_s5 }
  0x2b   :  { %p2389_p4 = pnand %p2387_p3, %p2384_p2 }
  0x2d   :  { %2392 = shalt.err (!%p2389_p4)
}
  0x2e   :  { %s2393_s3 = scalar_lea.vmem %s77_s29, 1024  ;;  %p2398_p6 = scmp.lt.s32.totalorder %s77_s29, %s77_s29 }
  0x2f   :  { %p2394_p5 = scmp.ne.s32.totalorder %s77_s29, %s2393_s3  ;;  %p2399_p7 = scmp.lt.s32.totalorder %s2393_s3, %s2393_s3 }
  0x31   :  { %p2400_p8 = por %p2399_p7, %p2398_p6 }
  0x33   :  { %p2401_p9 = pnand %p2400_p8, %p2394_p5 }
  0x35   :  { %2404 = shalt.err (!%p2401_p9)
}
  0x36   :  { %82 = dma.hbm_to_vmem [thread:$0]  %s2681_s5, 1024, %s77_s29, [#allocation12], %s2529_s1, %s2529_s1, %s2530_s25  }
  0x37   :  { %s2405_s20 = scalar_lea.hbm %s2676_s0, 1408 }
  0x38   :  { %p2406_p10 = scmp.ne.s32.totalorder %s2676_s0, %s2405_s20  ;;  %p2409_p11 = scmp.lt.u32.totalorder %s2405_s20, %s2676_s0 }
  0x3a   :  { %p2411_p12 = pnand %p2409_p11, %p2406_p10 }
  0x3c   :  { %2414 = shalt.err (!%p2411_p12)
}
  0x3d   :  { %s2415_s26 = scalar_lea.vmem %s24_s8, 1408  ;;  %p2420_p0 = scmp.lt.s32.totalorder %s24_s8, %s24_s8 }
  0x3e   :  { %p2416_p13 = scmp.ne.s32.totalorder %s24_s8, %s2415_s26  ;;  %p2421_p1 = scmp.lt.s32.totalorder %s2415_s26, %s2415_s26 }
  0x40   :  { %p2422_p2 = por %p2421_p1, %p2420_p0 }
  0x42   :  { %p2423_p3 = pnand %p2422_p2, %p2416_p13 }
  0x44   :  { %2426 = shalt.err (!%p2423_p3)
}
  0x45   :  { %26 = dma.hbm_to_vmem [thread:$0]  %s2676_s0, 1408, %s24_s8, [#allocation3]  }
  0x46   :  { %s2533_s25 = smov [#allocation7]   ;;  %s2534_s28 = smov [#allocation10]  }
  0x47   :  { %s45_s27 = sshll.u32 %s2533_s25, 4  ;;  %s67_s29 = sshll.u32 %s2534_s28, 4  ;;  %s46_s27 = int_to_ptr.vmem [resolvable:$true] %s45_s27  ;;  %s68_s29 = int_to_ptr.vmem [resolvable:$true] %s67_s29 }
  0x48   :  { %s2427_s10 = scalar_lea.hbm %s2678_s2, 32 }
  0x49   :  { %p2428_p4 = scmp.ne.s32.totalorder %s2678_s2, %s2427_s10  ;;  %p2431_p5 = scmp.lt.u32.totalorder %s2427_s10, %s2678_s2 }
  0x4b   :  { %p2433_p6 = pnand %p2431_p5, %p2428_p4 }
  0x4d   :  { %2436 = shalt.err (!%p2433_p6)
}
  0x4e   :  { %s2437_s0 = scalar_lea.vmem %s46_s27, 32  ;;  %p2442_p8 = scmp.lt.s32.totalorder %s46_s27, %s46_s27 }
  0x4f   :  { %p2438_p7 = scmp.ne.s32.totalorder %s46_s27, %s2437_s0  ;;  %p2443_p9 = scmp.lt.s32.totalorder %s2437_s0, %s2437_s0 }
  0x51   :  { %p2444_p10 = por %p2443_p9, %p2442_p8 }
  0x53   :  { %p2445_p11 = pnand %p2444_p10, %p2438_p7 }
  0x55   :  { %2448 = shalt.err (!%p2445_p11)
}
  0x56   :  { %48 = dma.hbm_to_vmem [thread:$0]  %s2678_s2, 32, %s46_s27, [#allocation6]  }
  0x57   :  { %s2449_s17 = scalar_lea.hbm %s2680_s4, 16 }
  0x58   :  { %p2450_p12 = scmp.ne.s32.totalorder %s2680_s4, %s2449_s17  ;;  %p2453_p13 = scmp.lt.u32.totalorder %s2449_s17, %s2680_s4 }
  0x5a   :  { %p2455_p0 = pnand %p2453_p13, %p2450_p12 }
  0x5c   :  { %2458 = shalt.err (!%p2455_p0)
}
  0x5d   :  { %s2459_s22 = scalar_lea.vmem %s68_s29, 16  ;;  %s2463_s23 = scalar_lea.vmem %s68_s29, 32 }
  0x5e   :  { %p2460_p1 = scmp.ne.s32.totalorder %s68_s29, %s2459_s22  ;;  %p2464_p2 = scmp.lt.s32.totalorder %s68_s29, %s68_s29 }
  0x5f   :  { %p2465_p3 = scmp.lt.s32.totalorder %s2463_s23, %s2459_s22 }
  0x61   :  { %p2466_p4 = por %p2465_p3, %p2464_p2 }
  0x63   :  { %p2467_p5 = pnand %p2466_p4, %p2460_p1 }
  0x65   :  { %2470 = shalt.err (!%p2467_p5)
}
  0x66   :  { %70 = dma.hbm_to_vmem [thread:$0]  %s2680_s4, 16, %s68_s29, [#allocation9]  }
  0x67   :  { %s2535_s26 = smov [#allocation13]   ;;  %s2471_s27 = scalar_lea.hbm %s2682_s6, 16 }
  0x68   :  { %s89_s5 = sshll.u32 %s2535_s26, 4  ;;  %p2472_p6 = scmp.ne.s32.totalorder %s2682_s6, %s2471_s27  ;;  %s90_s5 = int_to_ptr.vmem [resolvable:$true] %s89_s5 }
  0x69   :  { %p2475_p7 = scmp.lt.u32.totalorder %s2471_s27, %s2682_s6 }
  0x6b   :  { %p2477_p8 = pnand %p2475_p7, %p2472_p6 }
  0x6d   :  { %2480 = shalt.err (!%p2477_p8)
}
  0x6e   :  { %s2481_s11 = scalar_lea.vmem %s90_s5, 16  ;;  %s2485_s4 = scalar_lea.vmem %s90_s5, 32 }
  0x6f   :  { %p2482_p9 = scmp.ne.s32.totalorder %s90_s5, %s2481_s11  ;;  %p2486_p10 = scmp.lt.s32.totalorder %s90_s5, %s90_s5 }
  0x70   :  { %p2487_p11 = scmp.lt.s32.totalorder %s2485_s4, %s2481_s11 }
  0x72   :  { %p2488_p12 = por %p2487_p11, %p2486_p10 }
  0x74   :  { %p2489_p13 = pnand %p2488_p12, %p2482_p9 }
  0x76   :  { %2492 = shalt.err (!%p2489_p13)
}
  0x77   :  { %92 = dma.hbm_to_vmem [thread:$0]  %s2682_s6, 16, %s90_s5, [#allocation12]  }
  0x78   :  { %2515 = dma.done.wait [#allocation3], 1408  }
  0x79   :  { %2516 = vsyncadd [#allocation3], 4294965888 }
  0x7a   :  { %2517 = dma.done.wait [#allocation6], 22560  }
  0x7b   :  { %2518 = vsyncadd [#allocation6], 4294944736 }
  0x7c   :  { %2519 = dma.done.wait [#allocation9], 2064  }
  0x7d   :  { %2520 = vsyncadd [#allocation9], 4294965232 }
  0x7e   :  { %2521 = dma.done.wait [#allocation12], 1040  }
  0x7f   :  { %2522 = vsyncadd [#allocation12], 4294966256  ;;  %v2051_v0 = vld [vmem:[#allocation5 + $0x204] ss:$8 sps:$4 sm:$0xff]   ;;  %v2053_v1 = vld [vmem:[#allocation5 + $0x200] ss:$8 sps:$4 sm:$0xff]  }
  0x80   :  { %1287 = vmatprep.subr.bf16.mxu0 %v2051_v0  ;;  %v2054_v2 = vld [vmem:[#allocation5 + $0x214] ss:$8 sps:$4 sm:$0xff]   ;;  %v2056_v3 = vld [vmem:[#allocation5 + $0x210] ss:$8 sps:$4 sm:$0xff]   ;;  %v2057_v4 = vld [vmem:[#allocation5 + $0x224] ss:$8 sps:$4 sm:$0xff]  }
  0x81   :  { %1288 = vmatpush1.bf16.msra.mxu0 %v2053_v1  ;;  %v2059_v5 = vld [vmem:[#allocation5 + $0x220] ss:$8 sps:$4 sm:$0xff]   ;;  %v2060_v6 = vld [vmem:[#allocation5 + $0x234] ss:$8 sps:$4 sm:$0xff]   ;;  %v2072_v7 = vld [vmem:[#allocation5 + $0x4] ss:$8 sps:$4 sm:$0xff]  }
  0x82   :  { %1289 = vmatprep.subr.bf16.mxu0 %v2054_v2  ;;  %v2062_v8 = vld [vmem:[#allocation5 + $0x230] ss:$8 sps:$4 sm:$0xff]   ;;  %v2063_v9 = vld [vmem:[#allocation5 + $0x244] ss:$8 sps:$4 sm:$0xff]   ;;  %v2076_v10 = vld [vmem:[#allocation5] ss:$8 sps:$4 sm:$0xff]   ;;  %1205 = vmatprep.subr.bf16.mxu1 %v2072_v7 }
  0x83   :  { %v2078_v11 = vld [vmem:[#allocation5 + $0x14] ss:$8 sps:$4 sm:$0xff]   ;;  %1206 = vmatpush1.bf16.msra.mxu1 %v2076_v10  ;;  %v2065_v12 = vld [vmem:[#allocation5 + $0x240] ss:$8 sps:$4 sm:$0xff]   ;;  %v2082_v13 = vld [vmem:[#allocation5 + $0x10] ss:$8 sps:$4 sm:$0xff]  }
  0x84   :  { %1207 = vmatprep.subr.bf16.mxu1 %v2078_v11  ;;  %v2084_v14 = vld [vmem:[#allocation5 + $0x24] ss:$8 sps:$4 sm:$0xff]   ;;  %v2066_v15 = vld [vmem:[#allocation5 + $0x254] ss:$8 sps:$4 sm:$0xff]   ;;  %v2088_v16 = vld [vmem:[#allocation5 + $0x20] ss:$8 sps:$4 sm:$0xff]  }
  0x85   :  { %1290 = vmatpush1.bf16.msra.mxu0 %v2056_v3  ;;  %v2090_v17 = vld [vmem:[#allocation5 + $0x34] ss:$8 sps:$4 sm:$0xff]   ;;  %v2068_v18 = vld [vmem:[#allocation5 + $0x250] ss:$8 sps:$4 sm:$0xff]   ;;  %v2069_v19 = vld [vmem:[#allocation5 + $0x264] ss:$8 sps:$4 sm:$0xff]  }
  0x86   :  { %1291 = vmatprep.subr.bf16.mxu0 %v2057_v4  ;;  %v2094_v20 = vld [vmem:[#allocation5 + $0x30] ss:$8 sps:$4 sm:$0xff]   ;;  %v2096_v21 = vld [vmem:[#allocation5 + $0x44] ss:$8 sps:$4 sm:$0xff]   ;;  %v2071_v22 = vld [vmem:[#allocation5 + $0x260] ss:$8 sps:$4 sm:$0xff]  }
  0x87   :  { %1208 = vmatpush1.bf16.msra.mxu1 %v2082_v13  ;;  %v2074_v23 = vld [vmem:[#allocation5 + $0x274] ss:$8 sps:$4 sm:$0xff]   ;;  %v2100_v24 = vld [vmem:[#allocation5 + $0x40] ss:$8 sps:$4 sm:$0xff]   ;;  %v2077_v26 = vld [vmem:[#allocation5 + $0x270] ss:$8 sps:$4 sm:$0xff]  }
  0x88   :  { %1209 = vmatprep.subr.bf16.mxu1 %v2084_v14  ;;  %v2102_v25 = vld [vmem:[#allocation5 + $0x54] ss:$8 sps:$4 sm:$0xff]   ;;  %v2080_v27 = vld [vmem:[#allocation5 + $0x284] ss:$8 sps:$4 sm:$0xff]   ;;  %v2106_v28 = vld [vmem:[#allocation5 + $0x50] ss:$8 sps:$4 sm:$0xff]  }
  0x89   :  { %1292 = vmatpush1.bf16.msra.mxu0 %v2059_v5  ;;  %v2108_v29 = vld [vmem:[#allocation5 + $0x64] ss:$8 sps:$4 sm:$0xff]   ;;  %v2083_v30 = vld [vmem:[#allocation5 + $0x280] ss:$8 sps:$4 sm:$0xff]   ;;  %v2086_v31 = vld [vmem:[#allocation5 + $0x294] ss:$8 sps:$4 sm:$0xff]  }
  0x8a   :  { %1293 = vmatprep.subr.bf16.mxu0 %v2060_v6  ;;  %v2112_v32 = vld [vmem:[#allocation5 + $0x60] ss:$8 sps:$4 sm:$0xff]   ;;  %v2114_v33 = vld [vmem:[#allocation5 + $0x74] ss:$8 sps:$4 sm:$0xff]   ;;  %v2089_v35 = vld [vmem:[#allocation5 + $0x290] ss:$8 sps:$4 sm:$0xff]  }
  0x8b   :  { %1210 = vmatpush1.bf16.msra.mxu1 %v2088_v16  ;;  %v120_v34 = vld [vmem:[#allocation2 + $0x28] sm:$0xff]  ;;  %v2092_v37 = vld [vmem:[#allocation5 + $0x2a4] ss:$8 sps:$4 sm:$0xff]   ;;  %v2095_v40 = vld [vmem:[#allocation5 + $0x2a0] ss:$8 sps:$4 sm:$0xff]   ;;  %vm2538_vm0 = vmmov 0  }
  0x8c   :  { %1211 = vmatprep.subr.bf16.mxu1 %v2090_v17  ;;  %v131_v36 = vpack.c.bf16 %v120_v34, %v120_v34  ;;  %v2118_v38 = vld [vmem:[#allocation5 + $0x70] ss:$8 sps:$4 sm:$0xff]   ;;  %v2120_v39 = vld [vmem:[#allocation5 + $0x84] ss:$8 sps:$4 sm:$0xff]   ;;  %v2098_v41 = vld [vmem:[#allocation5 + $0x2b4] ss:$8 sps:$4 sm:$0xff]  }
  0x8d   :  { %1294 = vmatpush1.bf16.msra.mxu0 %v2062_v8  ;;  %v2124_v42 = vld [vmem:[#allocation5 + $0x80] ss:$8 sps:$4 sm:$0xff]   ;;  %v2126_v43 = vld [vmem:[#allocation5 + $0x94] ss:$8 sps:$4 sm:$0xff]   ;;  %v2101_v44 = vld [vmem:[#allocation5 + $0x2b0] ss:$8 sps:$4 sm:$0xff]  }
  0x8e   :  { %1295 = vmatprep.subr.bf16.mxu0 %v2063_v9  ;;  %1319 = vmatprep.mubr.bf16.mxu0 %v131_v36  ;;  %v2104_v45 = vld [vmem:[#allocation5 + $0x2c4] ss:$8 sps:$4 sm:$0xff]   ;;  %v2131_v46 = vld [vmem:[#allocation5 + $0x90] ss:$8 sps:$4 sm:$0xff]   ;;  %v2107_v48 = vld [vmem:[#allocation5 + $0x2c0] ss:$8 sps:$4 sm:$0xff]  }
  0x8f   :  { %1212 = vmatpush1.bf16.msra.mxu1 %v2094_v20  ;;  %v2132_v47 = vld [vmem:[#allocation5 + $0xa4] ss:$8 sps:$4 sm:$0xff]   ;;  %v2110_v49 = vld [vmem:[#allocation5 + $0x2d4] ss:$8 sps:$4 sm:$0xff]   ;;  %v2137_v50 = vld [vmem:[#allocation5 + $0xa0] ss:$8 sps:$4 sm:$0xff]  }
  0x90   :  { %1213 = vmatprep.subr.bf16.mxu1 %v2096_v21  ;;  %v2138_v51 = vld [vmem:[#allocation5 + $0xb4] ss:$8 sps:$4 sm:$0xff]   ;;  %v2113_v52 = vld [vmem:[#allocation5 + $0x2d0] ss:$8 sps:$4 sm:$0xff]   ;;  %v2116_v53 = vld [vmem:[#allocation5 + $0x2e4] ss:$8 sps:$4 sm:$0xff]  }
  0x91   :  { %1296 = vmatpush1.bf16.msra.mxu0 %v2065_v12  ;;  %v116_v54 = vld [vmem:[#allocation2 + $0x8] sm:$0xff]  ;;  %v2144_v57 = vld [vmem:[#allocation5 + $0xc4] ss:$8 sps:$4 sm:$0xff]   ;;  %v2119_v58 = vld [vmem:[#allocation5 + $0x2e0] ss:$8 sps:$4 sm:$0xff]   ;;  %s2539_s6 = smov [#allocation14]  }
  0x92   :  { %1297 = vmatprep.subr.bf16.mxu0 %v2066_v15  ;;  %v2143_v55 = vld [vmem:[#allocation5 + $0xb0] ss:$8 sps:$4 sm:$0xff]   ;;  %v127_v56 = vpack.c.bf16 %v116_v54, %v116_v54  ;;  %v2122_v59 = vld [vmem:[#allocation5 + $0x2f4] ss:$8 sps:$4 sm:$0xff]   ;;  %v2149_v60 = vld [vmem:[#allocation5 + $0xc0] ss:$8 sps:$4 sm:$0xff]  }
  0x93   :  { %1214 = vmatpush1.bf16.msra.mxu1 %v2100_v24  ;;  %v2150_v61 = vld [vmem:[#allocation5 + $0xd4] ss:$8 sps:$4 sm:$0xff]   ;;  %v2125_v62 = vld [vmem:[#allocation5 + $0x2f0] ss:$8 sps:$4 sm:$0xff]   ;;  %v119_v63 = vld [vmem:[#allocation2 + $0x20] sm:$0xff]  ;;  %s1751_s13 = sshll.u32 %s2539_s6, 4  ;;  %s1752_s13 = int_to_ptr.vmem [resolvable:$true] %s1751_s13 }
  0x94   :  { %1215 = vmatprep.subr.bf16.mxu1 %v2102_v25  ;;  %1237 = vmatprep.mubr.bf16.mxu1 %v127_v56  ;;  %v2130_v0 = vld [vmem:[#allocation5 + $0x304] ss:$8 sps:$4 sm:$0xff]   ;;  %v2155_v1 = vld [vmem:[#allocation5 + $0xd0] ss:$8 sps:$4 sm:$0xff]   ;;  %v130_v2 = vpack.c.bf16 %v119_v63, %v119_v63  ;;  %v2128_v4 = vld [vmem:[#allocation5 + $0x300] ss:$8 sps:$4 sm:$0xff]   ;;  %p2498_p1 = scmp.lt.s32.totalorder %s1752_s13, %s1752_s13 }
  0x95   :  { %1298 = vmatpush1.bf16.msra.mxu0 %v2068_v18  ;;  %v2156_v3 = vld [vmem:[#allocation5 + $0xe4] ss:$8 sps:$4 sm:$0xff]   ;;  %v2136_v5 = vld [vmem:[#allocation5 + $0x314] ss:$8 sps:$4 sm:$0xff]   ;;  %v2161_v6 = vld [vmem:[#allocation5 + $0xe0] ss:$8 sps:$4 sm:$0xff]  }
  0x96   :  { %1299 = vmatprep.subr.bf16.mxu0 %v2069_v19  ;;  %v2162_v7 = vld [vmem:[#allocation5 + $0xf4] ss:$8 sps:$4 sm:$0xff]   ;;  %v2134_v8 = vld [vmem:[#allocation5 + $0x310] ss:$8 sps:$4 sm:$0xff]   ;;  %v2142_v9 = vld [vmem:[#allocation5 + $0x324] ss:$8 sps:$4 sm:$0xff]  }
  0x97   :  { %1216 = vmatpush1.bf16.msra.mxu1 %v2106_v28  ;;  %v2167_v10 = vld [vmem:[#allocation5 + $0xf0] ss:$8 sps:$4 sm:$0xff]   ;;  %v115_v11 = vld [vmem:[#allocation2] sm:$0xff]  ;;  %v2148_v14 = vld [vmem:[#allocation5 + $0x334] ss:$8 sps:$4 sm:$0xff]   ;;  %vm1743_vm1 = vcmask 15360  }
  0x98   :  { %1217 = vmatprep.subr.bf16.mxu1 %v2108_v29  ;;  %v2170_v12 = vld [vmem:[#allocation5 + $0x104] ss:$8 sps:$4 sm:$0xff]   ;;  %v2140_v13 = vld [vmem:[#allocation5 + $0x320] ss:$8 sps:$4 sm:$0xff]   ;;  %v126_v15 = vpack.c.bf16 %v115_v11, %v115_v11  ;;  %v2176_v17 = vld [vmem:[#allocation5 + $0x114] ss:$8 sps:$4 sm:$0xff]  }
  0x99   :  { %1300 = vmatpush1.bf16.msra.mxu0 %v2071_v22  ;;  %v2168_v16 = vld [vmem:[#allocation5 + $0x100] ss:$8 sps:$4 sm:$0xff]   ;;  %v2146_v18 = vld [vmem:[#allocation5 + $0x330] ss:$8 sps:$4 sm:$0xff]   ;;  %v2154_v19 = vld [vmem:[#allocation5 + $0x344] ss:$8 sps:$4 sm:$0xff]  }
  0x9a   :  { %1301 = vmatprep.subr.bf16.mxu0 %v2074_v23  ;;  %v2174_v20 = vld [vmem:[#allocation5 + $0x110] ss:$8 sps:$4 sm:$0xff]   ;;  %v2182_v21 = vld [vmem:[#allocation5 + $0x124] ss:$8 sps:$4 sm:$0xff]   ;;  %v2152_v23 = vld [vmem:[#allocation5 + $0x340] ss:$8 sps:$4 sm:$0xff]  }
  0x9b   :  { %1218 = vmatpush1.bf16.msra.mxu1 %v2112_v32  ;;  %v122_v22 = vld [vmem:[#allocation2 + $0x38] sm:$0xff]  ;;  %v2160_v25 = vld [vmem:[#allocation5 + $0x354] ss:$8 sps:$4 sm:$0xff]   ;;  %v2158_v28 = vld [vmem:[#allocation5 + $0x350] ss:$8 sps:$4 sm:$0xff]   ;;  %s2493_s14 = scalar_lea.vmem %s1752_s13, 128 }
  0x9c   :  { %1219 = vmatprep.subr.bf16.mxu1 %v2114_v33  ;;  %v133_v24 = vpack.c.bf16 %v122_v22, %v122_v22  ;;  %v2166_v29 = vld [vmem:[#allocation5 + $0x364] ss:$8 sps:$4 sm:$0xff]   ;;  %v2164_v32 = vld [vmem:[#allocation5 + $0x360] ss:$8 sps:$4 sm:$0xff]   ;;  %v2173_v33 = vld [vmem:[#allocation5 + $0x374] ss:$8 sps:$4 sm:$0xff]   ;;  %p2494_p0 = scmp.ne.s32.totalorder %s1752_s13, %s2493_s14  ;;  %p2499_p2 = scmp.lt.s32.totalorder %s2493_s14, %s2493_s14 }
  0x9d   :  { %1302 = vmatpush1.bf16.msra.mxu0 %v2077_v26  ;;  %v2180_v26 = vld [vmem:[#allocation5 + $0x120] ss:$8 sps:$4 sm:$0xff]   ;;  %v2171_v36 = vld [vmem:[#allocation5 + $0x370] ss:$8 sps:$4 sm:$0xff]   ;;  %v2215_v63 = vld [vmem:[#allocation5 + $0x3e4] ss:$8 sps:$4 sm:$0xff]  }
  0x9e   :  { %1303 = vmatprep.subr.bf16.mxu0 %v2080_v27  ;;  %v2188_v27 = vld [vmem:[#allocation5 + $0x134] ss:$8 sps:$4 sm:$0xff]   ;;  %v2192_v34 = vld [vmem:[#allocation5 + $0x140] ss:$8 sps:$4 sm:$0xff]   ;;  %v2195_v54 = vld [vmem:[#allocation5 + $0x3b0] ss:$8 sps:$4 sm:$0xff]   ;;  %p2500_p3 = por %p2499_p2, %p2498_p1 }
  0x9f   :  { %1220 = vmatpush1.bf16.msra.mxu1 %v2118_v38  ;;  %v2198_v38 = vld [vmem:[#allocation5 + $0x150] ss:$8 sps:$4 sm:$0xff]   ;;  %v2254_v11 = vld [vmem:[#allocation5 + $0x1e4] ss:$8 sps:$4 sm:$0xff]   ;;  %v2237_v22 = vld [vmem:[#allocation5 + $0x420] ss:$8 sps:$4 sm:$0xff]  }
  0xa0   :  { %1221 = vmatprep.subr.bf16.mxu1 %v2120_v39  ;;  %v2206_v39 = vld [vmem:[#allocation5 + $0x164] ss:$8 sps:$4 sm:$0xff]   ;;  %v2222_v56 = vld [vmem:[#allocation5 + $0x190] ss:$8 sps:$4 sm:$0xff]   ;;  %p2501_p4 = pnand %p2500_p3, %p2494_p0 }
  0xa1   :  { %1304 = vmatpush1.bf16.msra.mxu0 %v2083_v30  ;;  %v2186_v30 = vld [vmem:[#allocation5 + $0x130] ss:$8 sps:$4 sm:$0xff]  }
  0xa2   :  { %1305 = vmatprep.subr.bf16.mxu0 %v2086_v31  ;;  %v2194_v31 = vld [vmem:[#allocation5 + $0x144] ss:$8 sps:$4 sm:$0xff]  }
  0xa3   :  { %1222 = vmatpush1.bf16.msra.mxu1 %v2124_v42  ;;  %v118_v42 = vld [vmem:[#allocation2 + $0x18] sm:$0xff] }
  0xa4   :  { %1223 = vmatprep.subr.bf16.mxu1 %v2126_v43  ;;  %v2204_v43 = vld [vmem:[#allocation5 + $0x160] ss:$8 sps:$4 sm:$0xff]  }
  0xa5   :  { %1306 = vmatpush1.bf16.msra.mxu0 %v2089_v35  ;;  %v2200_v35 = vld [vmem:[#allocation5 + $0x154] ss:$8 sps:$4 sm:$0xff]  }
  0xa6   :  { %1307 = vmatprep.subr.bf16.mxu0 %v2092_v37  ;;  %v2179_v37 = vld [vmem:[#allocation5 + $0x384] ss:$8 sps:$4 sm:$0xff]  }
  0xa7   :  { %1224 = vmatpush1.bf16.msra.mxu1 %v2131_v46  ;;  %v2183_v46 = vld [vmem:[#allocation5 + $0x390] ss:$8 sps:$4 sm:$0xff]  }
  0xa8   :  { %1225 = vmatprep.subr.bf16.mxu1 %v2132_v47  ;;  %v2191_v47 = vld [vmem:[#allocation5 + $0x3a4] ss:$8 sps:$4 sm:$0xff]  }
  0xa9   :  { %1308 = vmatpush1.bf16.msra.mxu0 %v2095_v40  ;;  %v2177_v40 = vld [vmem:[#allocation5 + $0x380] ss:$8 sps:$4 sm:$0xff]  }
  0xaa   :  { %1309 = vmatprep.subr.bf16.mxu0 %v2098_v41  ;;  %v2185_v41 = vld [vmem:[#allocation5 + $0x394] ss:$8 sps:$4 sm:$0xff]  }
  0xab   :  { %1226 = vmatpush1.bf16.msra.mxu1 %v2137_v50  ;;  %v2189_v50 = vld [vmem:[#allocation5 + $0x3a0] ss:$8 sps:$4 sm:$0xff]  }
  0xac   :  { %1227 = vmatprep.subr.bf16.mxu1 %v2138_v51  ;;  %v2197_v51 = vld [vmem:[#allocation5 + $0x3b4] ss:$8 sps:$4 sm:$0xff]  }
  0xad   :  { %1310 = vmatpush1.bf16.msra.mxu0 %v2101_v44  ;;  %v129_v44 = vpack.c.bf16 %v118_v42, %v118_v42  ;;  %v2281_v42 = vld [vmem:[#allocation5 + $0x4c4] ss:$8 sps:$4 sm:$0xff]  }
  0xae   :  { %1311 = vmatprep.subr.bf16.mxu0 %v2104_v45  ;;  %v2212_v45 = vld [vmem:[#allocation5 + $0x174] ss:$8 sps:$4 sm:$0xff]  }
  0xaf   :  { %1228 = vmatpush1.bf16.msra.mxu1 %v2143_v55  ;;  %v2203_v55 = vld [vmem:[#allocation5 + $0x3c4] ss:$8 sps:$4 sm:$0xff]  }
  0xb0   :  { %1229 = vmatprep.subr.bf16.mxu1 %v2144_v57  ;;  %v2230_v57 = vld [vmem:[#allocation5 + $0x1a4] ss:$8 sps:$4 sm:$0xff]  }
  0xb1   :  { %1312 = vmatpush1.bf16.msra.mxu0 %v2107_v48  ;;  %v2210_v48 = vld [vmem:[#allocation5 + $0x170] ss:$8 sps:$4 sm:$0xff]  }
  0xb2   :  { %1313 = vmatprep.subr.bf16.mxu0 %v2110_v49  ;;  %v2218_v49 = vld [vmem:[#allocation5 + $0x184] ss:$8 sps:$4 sm:$0xff]  }
  0xb3   :  { %1230 = vmatpush1.bf16.msra.mxu1 %v2149_v60  ;;  %v2228_v60 = vld [vmem:[#allocation5 + $0x1a0] ss:$8 sps:$4 sm:$0xff]  }
  0xb4   :  { %1231 = vmatprep.subr.bf16.mxu1 %v2150_v61  ;;  %v2236_v61 = vld [vmem:[#allocation5 + $0x1b4] ss:$8 sps:$4 sm:$0xff]  }
  0xb5   :  { %1314 = vmatpush1.bf16.msra.mxu0 %v2113_v52  ;;  %v2216_v52 = vld [vmem:[#allocation5 + $0x180] ss:$8 sps:$4 sm:$0xff]  }
  0xb6   :  { %1315 = vmatprep.subr.bf16.mxu0 %v2116_v53  ;;  %v2224_v53 = vld [vmem:[#allocation5 + $0x194] ss:$8 sps:$4 sm:$0xff]  }
  0xb7   :  { %1232 = vmatpush1.bf16.msra.mxu1 %v2155_v1  ;;  %v2242_v1 = vld [vmem:[#allocation5 + $0x1c4] ss:$8 sps:$4 sm:$0xff]  }
  0xb8   :  { %1233 = vmatprep.subr.bf16.mxu1 %v2156_v3  ;;  %v2221_v3 = vld [vmem:[#allocation5 + $0x3f4] ss:$8 sps:$4 sm:$0xff]  }
  0xb9   :  { %1316 = vmatpush1.bf16.msra.mxu0 %v2119_v58  ;;  %v2201_v58 = vld [vmem:[#allocation5 + $0x3c0] ss:$8 sps:$4 sm:$0xff]  }
  0xba   :  { %1317 = vmatprep.subr.bf16.mxu0 %v2122_v59  ;;  %v2209_v59 = vld [vmem:[#allocation5 + $0x3d4] ss:$8 sps:$4 sm:$0xff]  }
  0xbb   :  { %1234 = vmatpush1.bf16.msra.mxu1 %v2161_v6  ;;  %v121_v6 = vld [vmem:[#allocation2 + $0x30] sm:$0xff] }
  0xbc   :  { %1235 = vmatprep.subr.bf16.mxu1 %v2162_v7  ;;  %v2248_v7 = vld [vmem:[#allocation5 + $0x1d4] ss:$8 sps:$4 sm:$0xff]  }
  0xbd   :  { %1318 = vmatpush1.bf16.msra.mxu0 %v2125_v62  ;;  %v2207_v62 = vld [vmem:[#allocation5 + $0x3d0] ss:$8 sps:$4 sm:$0xff]  }
  0xbe   :  { %1328 = vmatprep.subr.bf16.mxu0 %v2130_v0  ;;  %v2234_v0 = vld [vmem:[#allocation5 + $0x1b0] ss:$8 sps:$4 sm:$0xff]  }
  0xbf   :  { %1236 = vmatpush1.bf16.msra.mxu1 %v2167_v10  ;;  %v2246_v10 = vld [vmem:[#allocation5 + $0x1d0] ss:$8 sps:$4 sm:$0xff]  }
  0xc0   :  { %1320 = vmatmul.mubr.bf16.vlgmr.msra.gmra.mrb[0].mxu0 %v130_v2  ;;  %1246 = vmatprep.subr.bf16.mxu1 %v2170_v12  ;;  %v2213_v2 = vld [vmem:[#allocation5 + $0x3e0] ss:$8 sps:$4 sm:$0xff]  }
  0xc1   :  { %1329 = vmatpush1.bf16.msra.mxu0 %v2128_v4  ;;  %1360 = vmatprep.mubr.bf16.mxu0 %v133_v24  ;;  %v2240_v4 = vld [vmem:[#allocation5 + $0x1c0] ss:$8 sps:$4 sm:$0xff]  }
  0xc2   :  { %1330 = vmatprep.subr.bf16.mxu0 %v2136_v5  ;;  %1238 = vmatmul.mubr.bf16.vlgmr.msra.gmra.mrb[0].mxu1 %v126_v15  ;;  %v2219_v5 = vld [vmem:[#allocation5 + $0x3f0] ss:$8 sps:$4 sm:$0xff]   ;;  %v2225_v12 = vld [vmem:[#allocation5 + $0x400] ss:$8 sps:$4 sm:$0xff]  }
  0xc3   :  { %1247 = vmatpush1.bf16.msra.mxu1 %v2168_v16  ;;  %1278 = vmatprep.mubr.bf16.mxu1 %v129_v44  ;;  %v2252_v15 = vld [vmem:[#allocation5 + $0x1e0] ss:$8 sps:$4 sm:$0xff]   ;;  %v2284_v44 = vld [vmem:[#allocation5 + $0x4d4] ss:$8 sps:$4 sm:$0xff]  }
  0xc4   :  { %1248 = vmatprep.subr.bf16.mxu1 %v2176_v17  ;;  %v2260_v17 = vld [vmem:[#allocation5 + $0x1f4] ss:$8 sps:$4 sm:$0xff]  }
  0xc5   :  { %1331 = vmatpush1.bf16.msra.mxu0 %v2134_v8  ;;  %v2227_v8 = vld [vmem:[#allocation5 + $0x404] ss:$8 sps:$4 sm:$0xff]  }
  0xc6   :  { %1332 = vmatprep.subr.bf16.mxu0 %v2142_v9  ;;  %v124_v9 = vld [vmem:[#allocation2 + $0x48] sm:$0xff] }
  0xc7   :  { %1249 = vmatpush1.bf16.msra.mxu1 %v2174_v20  ;;  %v135_v16 = vpack.c.bf16 %v124_v9, %v124_v9  ;;  %v2258_v20 = vld [vmem:[#allocation5 + $0x1f0] ss:$8 sps:$4 sm:$0xff]  }
  0xc8   :  { %1250 = vmatprep.subr.bf16.mxu1 %v2182_v21  ;;  %v117_v21 = vld [vmem:[#allocation2 + $0x10] sm:$0xff]  ;;  %v2317_v9 = vld [vmem:[#allocation8 + $0x48] sm:$0xff]  }
  0xc9   :  { %1333 = vmatpush1.bf16.msra.mxu0 %v2140_v13  ;;  %v132_v13 = vpack.c.bf16 %v121_v6, %v121_v6  ;;  %v128_v24 = vpack.c.bf16 %v117_v21, %v117_v21  ;;  %v2329_v21 = vld [vmem:[#allocation8 + $0x78] sm:$0xff]  }
  0xca   :  { %1334 = vmatprep.subr.bf16.mxu0 %v2148_v14  ;;  %v2233_v14 = vld [vmem:[#allocation5 + $0x414] ss:$8 sps:$4 sm:$0xff]  }
  0xcb   :  { %1251 = vmatpush1.bf16.msra.mxu1 %v2180_v26  ;;  %v2251_v26 = vld [vmem:[#allocation5 + $0x444] ss:$8 sps:$4 sm:$0xff]  }
  0xcc   :  { %1252 = vmatprep.subr.bf16.mxu1 %v2188_v27  ;;  %v2249_v27 = vld [vmem:[#allocation5 + $0x440] ss:$8 sps:$4 sm:$0xff]  }
  0xcd   :  { %1335 = vmatpush1.bf16.msra.mxu0 %v2146_v18  ;;  %v2231_v18 = vld [vmem:[#allocation5 + $0x410] ss:$8 sps:$4 sm:$0xff]  }
  0xce   :  { %1336 = vmatprep.subr.bf16.mxu0 %v2154_v19  ;;  %v2239_v19 = vld [vmem:[#allocation5 + $0x424] ss:$8 sps:$4 sm:$0xff]  }
  0xcf   :  { %1253 = vmatpush1.bf16.msra.mxu1 %v2186_v30  ;;  %v2263_v30 = vld [vmem:[#allocation5 + $0x464] ss:$8 sps:$4 sm:$0xff]  }
  0xd0   :  { %1254 = vmatprep.subr.bf16.mxu1 %v2194_v31  ;;  %v2261_v31 = vld [vmem:[#allocation5 + $0x460] ss:$8 sps:$4 sm:$0xff]  }
  0xd1   :  { %1337 = vmatpush1.bf16.msra.mxu0 %v2152_v23  ;;  %v2245_v23 = vld [vmem:[#allocation5 + $0x434] ss:$8 sps:$4 sm:$0xff]  }
  0xd2   :  { %1338 = vmatprep.subr.bf16.mxu0 %v2160_v25  ;;  %v2243_v25 = vld [vmem:[#allocation5 + $0x430] ss:$8 sps:$4 sm:$0xff]  }
  0xd3   :  { %1255 = vmatpush1.bf16.msra.mxu1 %v2192_v34  ;;  %v2269_v34 = vld [vmem:[#allocation5 + $0x484] ss:$8 sps:$4 sm:$0xff]  }
  0xd4   :  { %1256 = vmatprep.subr.bf16.mxu1 %v2200_v35  ;;  %v2267_v35 = vld [vmem:[#allocation5 + $0x480] ss:$8 sps:$4 sm:$0xff]  }
  0xd5   :  { %1339 = vmatpush1.bf16.msra.mxu0 %v2158_v28  ;;  %v2257_v28 = vld [vmem:[#allocation5 + $0x454] ss:$8 sps:$4 sm:$0xff]  }
  0xd6   :  { %1340 = vmatprep.subr.bf16.mxu0 %v2166_v29  ;;  %v2255_v29 = vld [vmem:[#allocation5 + $0x450] ss:$8 sps:$4 sm:$0xff]  }
  0xd7   :  { %1257 = vmatpush1.bf16.msra.mxu1 %v2198_v38  ;;  %v2275_v38 = vld [vmem:[#allocation5 + $0x4a4] ss:$8 sps:$4 sm:$0xff]  }
  0xd8   :  { %1258 = vmatprep.subr.bf16.mxu1 %v2206_v39  ;;  %v2273_v39 = vld [vmem:[#allocation5 + $0x4a0] ss:$8 sps:$4 sm:$0xff]  }
  0xd9   :  { %1341 = vmatpush1.bf16.msra.mxu0 %v2164_v32  ;;  %v2266_v32 = vld [vmem:[#allocation5 + $0x474] ss:$8 sps:$4 sm:$0xff]  }
  0xda   :  { %1342 = vmatprep.subr.bf16.mxu0 %v2173_v33  ;;  %v2264_v33 = vld [vmem:[#allocation5 + $0x470] ss:$8 sps:$4 sm:$0xff]  }
  0xdb   :  { %1259 = vmatpush1.bf16.msra.mxu1 %v2204_v43  ;;  %v2279_v43 = vld [vmem:[#allocation5 + $0x4c0] ss:$8 sps:$4 sm:$0xff]  }
  0xdc   :  { %1260 = vmatprep.subr.bf16.mxu1 %v2212_v45  ;;  %v2282_v45 = vld [vmem:[#allocation5 + $0x4d0] ss:$8 sps:$4 sm:$0xff]  }
  0xdd   :  { %1343 = vmatpush1.bf16.msra.mxu0 %v2171_v36  ;;  %v2272_v36 = vld [vmem:[#allocation5 + $0x494] ss:$8 sps:$4 sm:$0xff]  }
  0xde   :  { %1344 = vmatprep.subr.bf16.mxu0 %v2179_v37  ;;  %v2270_v37 = vld [vmem:[#allocation5 + $0x490] ss:$8 sps:$4 sm:$0xff]  }
  0xdf   :  { %1261 = vmatpush1.bf16.msra.mxu1 %v2210_v48  ;;  %v2290_v48 = vld [vmem:[#allocation5 + $0x4f4] ss:$8 sps:$4 sm:$0xff]  }
  0xe0   :  { %1262 = vmatprep.subr.bf16.mxu1 %v2218_v49  ;;  %v2288_v49 = vld [vmem:[#allocation5 + $0x4f0] ss:$8 sps:$4 sm:$0xff]  }
  0xe1   :  { %1345 = vmatpush1.bf16.msra.mxu0 %v2177_v40  ;;  %v2278_v40 = vld [vmem:[#allocation5 + $0x4b4] ss:$8 sps:$4 sm:$0xff]  }
  0xe2   :  { %1346 = vmatprep.subr.bf16.mxu0 %v2185_v41  ;;  %v2276_v41 = vld [vmem:[#allocation5 + $0x4b0] ss:$8 sps:$4 sm:$0xff]  }
  0xe3   :  { %1263 = vmatpush1.bf16.msra.mxu1 %v2216_v52 }
  0xe4   :  { %1264 = vmatprep.subr.bf16.mxu1 %v2224_v53  ;;  %v2291_v53 = vld [vmem:[#allocation5 + $0x500] ss:$8 sps:$4 sm:$0xff]  }
  0xe5   :  { %1347 = vmatpush1.bf16.msra.mxu0 %v2183_v46  ;;  %v2287_v46 = vld [vmem:[#allocation5 + $0x4e4] ss:$8 sps:$4 sm:$0xff]  }
  0xe6   :  { %1348 = vmatprep.subr.bf16.mxu0 %v2191_v47  ;;  %v2285_v47 = vld [vmem:[#allocation5 + $0x4e0] ss:$8 sps:$4 sm:$0xff]  }
  0xe7   :  { %1265 = vmatpush1.bf16.msra.mxu1 %v2222_v56  ;;  %v2536_v56 = vmov 0  }
  0xe8   :  { %1266 = vmatprep.subr.bf16.mxu1 %v2230_v57  ;;  %v2299_v57 = vld [vmem:[#allocation5 + $0x524] ss:$8 sps:$4 sm:$0xff]  }
  0xe9   :  { %1349 = vmatpush1.bf16.msra.mxu0 %v2189_v50  ;;  %v123_v50 = vld [vmem:[#allocation2 + $0x40] sm:$0xff] }
  0xea   :  { %1350 = vmatprep.subr.bf16.mxu0 %v2197_v51  ;;  %v2293_v51 = vld [vmem:[#allocation5 + $0x504] ss:$8 sps:$4 sm:$0xff]   ;;  %v134_v52 = vpack.c.bf16 %v123_v50, %v123_v50  ;;  %v2334_v50 = vld [vmem:[#allocation11 + $0x18] sm:$0xff]  }
  0xeb   :  { %1267 = vmatpush1.bf16.msra.mxu1 %v2228_v60  ;;  %v2300_v60 = vld [vmem:[#allocation5 + $0x530] ss:$8 sps:$4 sm:$0xff]  }
  0xec   :  { %1268 = vmatprep.subr.bf16.mxu1 %v2236_v61  ;;  %v2305_v61 = vld [vmem:[#allocation5 + $0x544] ss:$8 sps:$4 sm:$0xff]  }
  0xed   :  { %1351 = vmatpush1.bf16.msra.mxu0 %v2195_v54  ;;  %v2296_v54 = vld [vmem:[#allocation5 + $0x514] ss:$8 sps:$4 sm:$0xff]  }
  0xee   :  { %1352 = vmatprep.subr.bf16.mxu0 %v2203_v55  ;;  %v2294_v55 = vld [vmem:[#allocation5 + $0x510] ss:$8 sps:$4 sm:$0xff]  }
  0xef   :  { %1269 = vmatpush1.bf16.msra.mxu1 %v2234_v0  ;;  %v2306_v0 = vld [vmem:[#allocation5 + $0x550] ss:$8 sps:$4 sm:$0xff]  }
  0xf0   :  { %1270 = vmatprep.subr.bf16.mxu1 %v2242_v1  ;;  %v2311_v1 = vld [vmem:[#allocation5 + $0x564] ss:$8 sps:$4 sm:$0xff]  }
  0xf1   :  { %1353 = vmatpush1.bf16.msra.mxu0 %v2201_v58  ;;  %v2297_v58 = vld [vmem:[#allocation5 + $0x520] ss:$8 sps:$4 sm:$0xff]  }
  0xf2   :  { %1354 = vmatprep.subr.bf16.mxu0 %v2209_v59  ;;  %v2302_v59 = vld [vmem:[#allocation5 + $0x534] ss:$8 sps:$4 sm:$0xff]  }
  0xf3   :  { %1271 = vmatpush1.bf16.msra.mxu1 %v2240_v4  ;;  %v2312_v4 = vld [vmem:[#allocation5 + $0x570] ss:$8 sps:$4 sm:$0xff]  }
  0xf4   :  { %1272 = vmatprep.subr.bf16.mxu1 %v2248_v7  ;;  %v2315_v7 = vld [vmem:[#allocation8 + $0x40] sm:$0xff]  }
  0xf5   :  { %1355 = vmatpush1.bf16.msra.mxu0 %v2207_v62  ;;  %v2303_v62 = vld [vmem:[#allocation5 + $0x540] ss:$8 sps:$4 sm:$0xff]  }
  0xf6   :  { %1356 = vmatprep.subr.bf16.mxu0 %v2215_v63  ;;  %v2308_v63 = vld [vmem:[#allocation5 + $0x554] ss:$8 sps:$4 sm:$0xff]  }
  0xf7   :  { %1273 = vmatpush1.bf16.msra.mxu1 %v2246_v10  ;;  %v2318_v10 = vld [vmem:[#allocation8 + $0x8] sm:$0xff]  }
  0xf8   :  { %1274 = vmatprep.subr.bf16.mxu1 %v2254_v11  ;;  %v2319_v11 = vld [vmem:[#allocation8 + $0x50] sm:$0xff]  }
  0xf9   :  { %1357 = vmatpush1.bf16.msra.mxu0 %v2213_v2  ;;  %v2309_v2 = vld [vmem:[#allocation5 + $0x560] ss:$8 sps:$4 sm:$0xff]  }
  0xfa   :  { %1358 = vmatprep.subr.bf16.mxu0 %v2221_v3  ;;  %v2314_v3 = vld [vmem:[#allocation5 + $0x574] ss:$8 sps:$4 sm:$0xff]  }
  0xfb   :  { %1275 = vmatpush1.bf16.msra.mxu1 %v2252_v15  ;;  %v2323_v15 = vld [vmem:[#allocation8 + $0x60] sm:$0xff]  }
  0xfc   :  { %1276 = vmatprep.subr.bf16.mxu1 %v2260_v17  ;;  %v2325_v17 = vld [vmem:[#allocation8 + $0x68] sm:$0xff]  }
  0xfd   :  { %1359 = vmatpush1.bf16.msra.mxu0 %v2219_v5  ;;  %v125_v5 = vld [vmem:[#allocation2 + $0x50] sm:$0xff] }
  0xfe   :  { %1369 = vmatprep.subr.bf16.mxu0 %v2227_v8  ;;  %v136_v6 = vpack.c.bf16 %v125_v5, %v125_v5  ;;  %v2316_v8 = vld [vmem:[#allocation8] sm:$0xff]  }
  0xff   :  { %1277 = vmatpush1.bf16.msra.mxu1 %v2258_v20  ;;  %v2328_v20 = vld [vmem:[#allocation8 + $0x30] sm:$0xff]  }
 0x100   :  { %1361 = vmatmul.mubr.bf16.vlgmr.msra.gmra.mrb[0].mxu0 %v132_v13  ;;  %1965 = vmatprep.subr.bf16.mxu1 %v2315_v7  ;;  %v2321_v13 = vld [vmem:[#allocation8 + $0x58] sm:$0xff]  }
 0x101   :  { %1370 = vmatpush1.bf16.msra.mxu0 %v2225_v12  ;;  %1401 = vmatprep.mubr.bf16.mxu0 %v135_v16  ;;  %v2320_v12 = vld [vmem:[#allocation8 + $0x10] sm:$0xff]   ;;  %v2324_v16 = vld [vmem:[#allocation8 + $0x20] sm:$0xff]  }
 0x102   :  { %1371 = vmatprep.subr.bf16.mxu0 %v2233_v14  ;;  %1279 = vmatmul.mubr.bf16.vlgmr.msra.gmra.mrb[0].mxu1 %v128_v24  ;;  %v2322_v14 = vld [vmem:[#allocation8 + $0x18] sm:$0xff]  }
 0x103   :  { %1966 = vmatpush3.bf16.msra.mxu1 %v2316_v8 }
 0x104   :  { %1967 = vmatprep.subr.bf16.mxu1 %v2317_v9 }
 0x105   :  { %1372 = vmatpush1.bf16.msra.mxu0 %v2231_v18  ;;  %v2326_v18 = vld [vmem:[#allocation8 + $0x28] sm:$0xff]  }
 0x106   :  { %1373 = vmatprep.subr.bf16.mxu0 %v2239_v19  ;;  %v2327_v19 = vld [vmem:[#allocation8 + $0x70] sm:$0xff]  }
 0x107   :  { %1968 = vmatpush3.bf16.msra.mxu1 %v2318_v10 }
 0x108   :  { %1969 = vmatprep.subr.bf16.mxu1 %v2319_v11 }
 0x109   :  { %1374 = vmatpush1.bf16.msra.mxu0 %v2237_v22  ;;  %v2330_v22 = vld [vmem:[#allocation8 + $0x38] sm:$0xff]  }
 0x10a   :  { %1375 = vmatprep.subr.bf16.mxu0 %v2245_v23  ;;  %v2537_v23 = vmov 0.0  }
 0x10b   :  { %1970 = vmatpush3.bf16.msra.mxu1 %v2320_v12 }
 0x10c   :  { %1971 = vmatprep.subr.bf16.mxu1 %v2321_v13 }
 0x10d   :  { %1376 = vmatpush1.bf16.msra.mxu0 %v2243_v25 }
 0x10e   :  { %1377 = vmatprep.subr.bf16.mxu0 %v2251_v26 }
 0x10f   :  { %1972 = vmatpush3.bf16.msra.mxu1 %v2322_v14 }
 0x110   :  { %1973 = vmatprep.subr.bf16.mxu1 %v2323_v15 }
 0x111   :  { %1378 = vmatpush1.bf16.msra.mxu0 %v2249_v27 }
 0x112   :  { %1379 = vmatprep.subr.bf16.mxu0 %v2257_v28  ;;  %v315_v28 = vlaneseq }
 0x113   :  { %1974 = vmatpush3.bf16.msra.mxu1 %v2324_v16 }
 0x114   :  { %1975 = vmatprep.subr.bf16.mxu1 %v2325_v17 }
 0x115   :  { %1380 = vmatpush1.bf16.msra.mxu0 %v2255_v29  ;;  %v316_v29 = vshrl.u32 %v315_v28, 7 }
 0x116   :  { %1381 = vmatprep.subr.bf16.mxu0 %v2263_v30 }
 0x117   :  { %1976 = vmatpush3.bf16.msra.mxu1 %v2326_v18  ;;  %v317_v30 = vsub.s32 0, %v316_v29 }
 0x118   :  { %1977 = vmatprep.subr.bf16.mxu1 %v2327_v19 }
 0x119   :  { %1382 = vmatpush1.bf16.msra.mxu0 %v2261_v31  ;;  %v313_v31 = vld [vmem:[#allocation7] sm:$0x3] }
 0x11a   :  { %1383 = vmatprep.subr.bf16.mxu0 %v2266_v32  ;;  %v321_v32 = vsub.s32 1, %v316_v29 }
 0x11b   :  { %1978 = vmatpush3.bf16.msra.mxu1 %v2328_v20 }
 0x11c   :  { %1979 = vmatprep.subr.bf16.mxu1 %v2329_v21 }
 0x11d   :  { %1384 = vmatpush1.bf16.msra.mxu0 %v2264_v33  ;;  %v318_v33 = vrot.slane %v313_v31, %v317_v30 }
 0x11e   :  { %1385 = vmatprep.subr.bf16.mxu0 %v2269_v34  ;;  %v322_v34 = vrot.slane %v313_v31, %v321_v32 }
 0x11f   :  { %1980 = vmatpush3.bf16.msra.mxu1 %v2330_v22 }
 0x120   :  { %1996 = vmatprep.subr.bf16.mxu1 %v2537_v23 }
 0x121   :  { %1386 = vmatpush1.bf16.msra.mxu0 %v2267_v35 }
 0x122   :  { %1387 = vmatprep.subr.bf16.mxu0 %v2272_v36 }
 0x125   :  { %1388 = vmatpush1.bf16.msra.mxu0 %v2270_v37 }
 0x126   :  { %1389 = vmatprep.subr.bf16.mxu0 %v2275_v38 }
 0x129   :  { %1390 = vmatpush1.bf16.msra.mxu0 %v2273_v39 }
 0x12a   :  { %1391 = vmatprep.subr.bf16.mxu0 %v2278_v40 }
 0x12d   :  { %1392 = vmatpush1.bf16.msra.mxu0 %v2276_v41 }
 0x12e   :  { %1393 = vmatprep.subr.bf16.mxu0 %v2281_v42 }
 0x131   :  { %1394 = vmatpush1.bf16.msra.mxu0 %v2279_v43 }
 0x132   :  { %1395 = vmatprep.subr.bf16.mxu0 %v2284_v44 }
 0x135   :  { %1396 = vmatpush1.bf16.msra.mxu0 %v2282_v45 }
 0x136   :  { %1397 = vmatprep.subr.bf16.mxu0 %v2287_v46  ;;  %v2331_v46 = vld [vmem:[#allocation11] sm:$0xff]  }
 0x139   :  { %1398 = vmatpush1.bf16.msra.mxu0 %v2285_v47 }
 0x13a   :  { %1399 = vmatprep.subr.bf16.mxu0 %v2290_v48  ;;  %v2332_v48 = vld [vmem:[#allocation11 + $0x8] sm:$0xff]  }
 0x13d   :  { %1400 = vmatpush1.bf16.msra.mxu0 %v2288_v49  ;;  %v2333_v49 = vld [vmem:[#allocation11 + $0x10] sm:$0xff]  }
 0x13e   :  { %1410 = vmatprep.subr.bf16.mxu0 %v2293_v51  ;;  %v2335_v51 = vld [vmem:[#allocation11 + $0x20] sm:$0xff]  }
 0x140   :  { %1402 = vmatmul.mubr.bf16.vlgmr.msra.gmra.mrb[0].mxu0 %v134_v52  ;;  %v2336_v52 = vld [vmem:[#allocation11 + $0x28] sm:$0xff]  }
 0x141   :  { %1411 = vmatpush1.bf16.msra.mxu0 %v2291_v53  ;;  %1442 = vmatprep.mubr.bf16.mxu0 %v2536_v56  ;;  %v2337_v53 = vld [vmem:[#allocation11 + $0x30] sm:$0xff]   ;;  %v1939_v56 = vld [vmem:[#allocation10] ss:$0 sm:$0xff] }
 0x142   :  { %1412 = vmatprep.subr.bf16.mxu0 %v2296_v54  ;;  %v2338_v54 = vld [vmem:[#allocation11 + $0x38] sm:$0xff]  }
 0x145   :  { %1413 = vmatpush1.bf16.msra.mxu0 %v2294_v55 }
 0x146   :  { %1414 = vmatprep.subr.bf16.mxu0 %v2299_v57 }
 0x149   :  { %1415 = vmatpush1.bf16.msra.mxu0 %v2297_v58 }
 0x14a   :  { %1416 = vmatprep.subr.bf16.mxu0 %v2302_v59 }
 0x14d   :  { %1417 = vmatpush1.bf16.msra.mxu0 %v2300_v60 }
 0x14e   :  { %1418 = vmatprep.subr.bf16.mxu0 %v2305_v61 }
 0x151   :  { %1419 = vmatpush1.bf16.msra.mxu0 %v2303_v62 }
 0x152   :  { %1420 = vmatprep.subr.bf16.mxu0 %v2308_v63 }
 0x155   :  { %1421 = vmatpush1.bf16.msra.mxu0 %v2306_v0  ;;  %v1956_v0 = vld [vmem:[#allocation13] ss:$0 sm:$0xff] }
 0x156   :  { %1422 = vmatprep.subr.bf16.mxu0 %v2311_v1 }
 0x159   :  { %1423 = vmatpush1.bf16.msra.mxu0 %v2309_v2 }
 0x15a   :  { %1424 = vmatprep.subr.bf16.mxu0 %v2314_v3 }
 0x15d   :  { %1425 = vmatpush1.bf16.msra.mxu0 %v2312_v4 }
 0x160   :  { %1443 = vmatmul.mubr.bf16.vlgmr.msra.gmra.mrb[0].mxu0 %v136_v6 }
 0x1d5   :  { %v1280_v24 = vpop.f32.mrb[0].mxu1 }
 0x1d6   :  { %v1282_v25 = vpop.f32.mrb[1].mxu1  ;;  %v2016_v35 = vadd.f32 %v1280_v24, %v318_v33 }
 0x1d7   :  { %v1284_v26 = vpop.f32.mrb[2].mxu1  ;;  %v2018_v36 = vadd.f32 %v1282_v25, %v322_v34 }
 0x1d8   :  { %v1285_v27 = vpop.f32.mrb[3].mxu1 }
 0x233   :  { %v1444_v37 = vpop.f32.mrb[0].mxu0 }
 0x234   :  { %v2017_v38 = vadd.f32 %v2016_v35, %v1444_v37  ;;  %v1446_v39 = vpop.f32.mrb[1].mxu0 }
 0x235   :  { %v2019_v40 = vadd.f32 %v2018_v36, %v1446_v39  ;;  %v1448_v41 = vpop.f32.mrb[2].mxu0 }
 0x236   :  { %v1451_v42 = vmax.f32 %v2017_v38, 0.0  ;;  %v1449_v43 = vpop.f32.mrb[3].mxu0 }
 0x237   :  { %v1452_v44 = vmax.f32 %v2019_v40, 0.0 }
 0x238   :  { %v1453_v47 = vpack.c.bf16 %v1451_v42, %v1451_v42 }
 0x239   :  { %v1454_v45 = vpack.c.bf16 %v1452_v44, %v1452_v44 }
 0x23b   :  { %1622 = vmatprep.mubr.bf16.mxu1 %v1454_v45 }
 0x23c   :  { %1623 = vmatmul.mubr.bf16.vlgmr.msra.gmra.mrb[4].mxu1 %v1453_v47 }
 0x23d   :  { %1997 = vmatpush3.bf16.msra.mxu1 %v2331_v46  ;;  %2012 = vmatprep.mubr.msk.bf16.mxu1 %vm2538_vm0, %v2537_v23 }
 0x23e   :  { %1998 = vmatprep.subr.bf16.mxu1 %v2537_v23 }
 0x241   :  { %1999 = vmatpush3.bf16.msra.mxu1 %v2332_v48 }
 0x242   :  { %2000 = vmatprep.subr.bf16.mxu1 %v2537_v23 }
 0x245   :  { %2001 = vmatpush3.bf16.msra.mxu1 %v2333_v49 }
 0x246   :  { %2002 = vmatprep.subr.bf16.mxu1 %v2537_v23 }
 0x249   :  { %2003 = vmatpush3.bf16.msra.mxu1 %v2334_v50 }
 0x24a   :  { %2004 = vmatprep.subr.bf16.mxu1 %v2537_v23 }
 0x24d   :  { %2005 = vmatpush3.bf16.msra.mxu1 %v2335_v51 }
 0x24e   :  { %2006 = vmatprep.subr.bf16.mxu1 %v2537_v23 }
 0x251   :  { %2007 = vmatpush3.bf16.msra.mxu1 %v2336_v52 }
 0x252   :  { %2008 = vmatprep.subr.bf16.mxu1 %v2537_v23 }
 0x255   :  { %2009 = vmatpush3.bf16.msra.mxu1 %v2337_v53 }
 0x256   :  { %2010 = vmatprep.subr.bf16.mxu1 %v2537_v23 }
 0x259   :  { %2011 = vmatpush3.bf16.msra.mxu1 %v2338_v54 }
 0x30f   :  { %v1981_v55 = vpop.f32.mrb[4].mxu1 }
 0x310   :  { %v1982_v57 = vpop.f32.mrb[5].mxu1 }
 0x311   :  { %v1983_v58 = vadd.f32 %v1982_v57, %v1981_v55  ;;  %v1984_v59 = vpop.f32.mrb[6].mxu1 }
 0x312   :  { %v1985_v60 = vpop.f32.mrb[7].mxu1 }
 0x313   :  { %v1625_v61 = vadd.f32 %v1983_v58, %v1939_v56 }
 0x315   :  { %v1630_v62 = vmax.f32 %v1625_v61, 0.0 }
 0x317   :  { %v1631_v63 = vpack.c.bf16 %v1630_v62, %v1630_v62 }
 0x319   :  { %2013 = vmatmul.mubr.bf16.vlgmr.msra.gmra.mrb[8].mxu1 %v1631_v63 }
 0x3ec   :  { %v1737_v1 = vpop.f32.mrb[8].mxu1 }
 0x3ed   :  { %v1738_v2 = vadd.f32 %v1956_v0, %v1737_v1  ;;  %v2014_v3 = vpop.f32.mrb[9].mxu1 }
 0x3ee   :  { %v1740_v4 = vpop.f32.mrb[10].mxu1 }
 0x3ef   :  { %v2015_v5 = vpop.f32.mrb[11].mxu1  ;;  %1744 = vst.msk [vmem:[#allocation14] sm:$0xff] %vm1743_vm1, %v1738_v2 }
 0x3f0   :  { %2504 = shalt.err (!%p2501_p4)
}
 0x3f1   :  { %s2505_s15 = scalar_lea.hbm %s2683_s7, 128 }
 0x3f2   :  { %p2506_p5 = scmp.ne.s32.totalorder %s2683_s7, %s2505_s15  ;;  %p2509_p6 = scmp.lt.u32.totalorder %s2505_s15, %s2683_s7 }
 0x3f4   :  { %p2511_p7 = pnand %p2509_p6, %p2506_p5 }
 0x3f6   :  { %2514 = shalt.err (!%p2511_p7)
}
 0x3f7   :  { %1754 = dma.vmem_to_hbm [thread:$0]  %s1752_s13, 128, %s2683_s7, [#allocation4]  }
 0x3f8   :  { %2523 = dma.done.wait [#allocation4], 128  }
 0x3f9   :  { %2524 = vsyncadd [#allocation4], 4294967168 }
 0x3fa   :  { %1758 = vsyncpa [#allocation3], 1 }
 0x3fb   :  { %1759 = vsyncpa [#allocation6], 1 }
 0x3fc   :  { %1760 = vsyncpa [#allocation9], 1 }
 0x3fd   :  { %1761 = vsyncpa [#allocation12], 1 }
 0x3fe   :  { %1762 = vsyncpa [#allocation4], 1 }

</bundles_post_ra>
